<compile_context>
chip_gen: v7x
topology: tpu7x:2x2x1
jax: 0.10.0
libtpu: 0.0.40
codegen_flags: <defaults>
</compile_context>

<pallas_src>
import functools

import jax
import jax.numpy as jnp
import numpy as np
from jax.experimental import pallas as pl
from jax.experimental.pallas import tpu as pltpu

KS = 3          # kernel_size = 3, stride = 1, padding = 1 (SAME)
LN_EPS = 1e-5   # torch.nn.LayerNorm default


# ----------------------------------------------------------------------------
# Kernel: whole batch in one step, everything lane-dense (B, NP) with NP=256.
# ----------------------------------------------------------------------------
def _make_kernel(n_valid, eps=LN_EPS):
    inv_n = 1.0 / float(n_valid)   # normalize by the TRUE element count (168)

    def kernel(x_ref, m1_ref, b1_ref, g1_ref, be1_ref,
               m2_ref, b2_ref, g2_ref, be2_ref, o_ref):
        # x_ref  : (B, NP)  flattened, zero-padded input rows (also residual)
        # m*_ref : (NP, NP) conv as dense block-Toeplitz operator (zero-padded)
        # b*/g*/be* : (1, NP) bias / gamma / beta rows (zero in padded lanes)
        # o_ref  : (B, NP)  flattened output rows (padded lanes stay zero)

        def layer_norm(v, g, b):
            # One-pass LN over the 168 valid lanes of each row; the two
            # reductions are independent (shorter latency chain), and the
            # E[v^2]-mu^2 form is exact w.r.t. the zero padded lanes.
            s1 = jnp.sum(v, axis=-1, keepdims=True)
            s2 = jnp.sum(v * v, axis=-1, keepdims=True)
            mu = s1 * inv_n
            var = s2 * inv_n - mu * mu
            return (v - mu) * jax.lax.rsqrt(var + eps) * g + b

        x = x_ref[...]                                             # (B, NP)

        # conv1 (single MXU matmul, K=N=256) + bias, LayerNorm1, ReLU
        h = jnp.dot(x, m1_ref[...], preferred_element_type=jnp.float32)
        h = h + b1_ref[...]
        h = jnp.maximum(layer_norm(h, g1_ref[...], be1_ref[...]), 0.0)

        # conv2 (single MXU matmul) + bias, LayerNorm2, residual, ReLU
        y = jnp.dot(h, m2_ref[...], preferred_element_type=jnp.float32)
        y = y + b2_ref[...]
        y = layer_norm(y, g2_ref[...], be2_ref[...]) + x
        o_ref[...] = jnp.maximum(y, 0.0)                           # lane-dense store

    return kernel


# ----------------------------------------------------------------------------
# 3x3 SAME conv -> dense block-Toeplitz operator on flattened NHWC activations
# (index (i*W + j)*C + c).  jit-safe: the shift matrices are weight-independent
# numpy constants; the weight-dependent part is one einsum.
# ----------------------------------------------------------------------------
def _spatial_shift_matrices(H, W):
    HW = H * W
    taps = []
    for dh in range(KS):
        for dw in range(KS):
            s = np.zeros((HW, HW), np.float32)
            for i in range(H):
                i2 = i - (dh - 1)
                if not (0 <= i2 < H):
                    continue
                for j in range(W):
                    j2 = j - (dw - 1)
                    if 0 <= j2 < W:
                        s[i * W + j, i2 * W + j2] = 1.0
            taps.append(s)
    return np.stack(taps)   # (9, HW, HW), constant


def _conv3x3_as_dense(w, shift_mats, H, W):
    # w: (3, 3, Cin, Cout) HWIO (may be a tracer).  Returns (HW*Cin, HW*Cout).
    ks, _, cin, cout = w.shape
    wt = w.reshape(ks * ks, cin, cout)
    m = jnp.einsum('tpq,tio->piqo', jnp.asarray(shift_mats), wt)
    return m.reshape(H * W * cin, H * W * cout)


# ----------------------------------------------------------------------------
# Wrapper: NCHW in / NCHW out (matches the PyTorch module).  All reshapes /
# transposes / padding are layout plumbing; all FLOPs happen in the kernel.
# ----------------------------------------------------------------------------
@functools.partial(jax.jit, static_argnames=())
def residual_block_ln(x_nchw, w1, b1, g1, be1, w2, b2, g2, be2):
    B, C, H, W = x_nchw.shape
    Cout = w1.shape[-1]
    assert C == Cout, "residual add requires in_channels == out_channels"
    N = H * W * C
    NP = max(128, ((N + 127) // 128) * 128)   # 168 -> 256 lanes
    pad = NP - N

    shift_mats = _spatial_shift_matrices(H, W)

    # lane-dense flattened activations: (B, NP), NHWC order, zero padded lanes
    x_flat = jnp.transpose(x_nchw, (0, 2, 3, 1)).reshape(B, N)
    x_pad = jnp.pad(x_flat, ((0, 0), (0, pad)))

    def _pad_row(v):                          # (N,) -> (1, NP), zero padded
        return jnp.pad(v, (0, pad)).reshape(1, NP)

    m1 = jnp.pad(_conv3x3_as_dense(w1, shift_mats, H, W), ((0, pad), (0, pad)))
    m2 = jnp.pad(_conv3x3_as_dense(w2, shift_mats, H, W), ((0, pad), (0, pad)))
    b1f = _pad_row(jnp.tile(b1, H * W))                        # channel innermost
    b2f = _pad_row(jnp.tile(b2, H * W))
    g1f = _pad_row(jnp.transpose(g1, (1, 2, 0)).reshape(N))    # (C,H,W) -> NHWC flat
    be1f = _pad_row(jnp.transpose(be1, (1, 2, 0)).reshape(N))
    g2f = _pad_row(jnp.transpose(g2, (1, 2, 0)).reshape(N))
    be2f = _pad_row(jnp.transpose(be2, (1, 2, 0)).reshape(N))

    # Single step, no grid: every operand is one whole-array VMEM block
    # (~0.53 MB total), so there is no per-step overhead and no double-buffered
    # copies of the replicated operators.
    out_pad = pl.pallas_call(
        _make_kernel(N),
        out_shape=jax.ShapeDtypeStruct((B, NP), jnp.float32),
    )(x_pad, m1, b1f, g1f, be1f, m2, b2f, g2f, be2f)

    out = out_pad[:, :N].reshape(B, H, W, Cout)
    return jnp.transpose(out, (0, 3, 1, 2))   # back to NCHW


# ----------------------------------------------------------------------------
# Pure-JAX reference (mirrors the PyTorch module, NCHW).
# ----------------------------------------------------------------------------
def _reference(x, w1, b1, g1, be1, w2, b2, g2, be2, eps=LN_EPS):
    dn = ('NCHW', 'HWIO', 'NCHW')

    def conv(v, w, b):
        return jax.lax.conv_general_dilated(
            v, w, (1, 1), 'SAME', dimension_numbers=dn) + b[None, :, None, None]

    def ln(v, g, b):
        mu = jnp.mean(v, axis=(1, 2, 3), keepdims=True)
        var = jnp.mean(jnp.square(v - mu), axis=(1, 2, 3), keepdims=True)
        return (v - mu) * jax.lax.rsqrt(var + eps) * g[None] + b[None]

    h = jnp.maximum(ln(conv(x, w1, b1), g1, be1), 0.0)
    y = ln(conv(h, w2, b2), g2, be2) + x
    return jnp.maximum(y, 0.0)


if __name__ == "__main__":
    # H=6, W=7 are fixed by LayerNorm([out_channels, 6, 7]) in the spec.
    B, C, H, W = 2, 4, 6, 7

    key = jax.random.PRNGKey(0)
    keys = jax.random.split(key, 9)
    x = jax.random.normal(keys[0], (B, C, H, W), dtype=jnp.float32)
    # deterministic synthetic parameters (conv weights HWIO, LN params (C,H,W))
    w1 = jax.random.normal(keys[1], (KS, KS, C, C), dtype=jnp.float32) * 0.1
    b1 = jax.random.normal(keys[2], (C,), dtype=jnp.float32) * 0.1
    g1 = 1.0 + 0.1 * jax.random.normal(keys[3], (C, H, W), dtype=jnp.float32)
    be1 = 0.1 * jax.random.normal(keys[4], (C, H, W), dtype=jnp.float32)
    w2 = jax.random.normal(keys[5], (KS, KS, C, C), dtype=jnp.float32) * 0.1
    b2 = jax.random.normal(keys[6], (C,), dtype=jnp.float32) * 0.1
    g2 = 1.0 + 0.1 * jax.random.normal(keys[7], (C, H, W), dtype=jnp.float32)
    be2 = 0.1 * jax.random.normal(keys[8], (C, H, W), dtype=jnp.float32)

    out = jax.block_until_ready(
        residual_block_ln(x, w1, b1, g1, be1, w2, b2, g2, be2))
    ref = jax.block_until_ready(
        _reference(x, w1, b1, g1, be1, w2, b2, g2, be2))

    np.testing.assert_allclose(np.asarray(out), np.asarray(ref),
                               atol=1e-4, rtol=1e-3)
    print("KERNEL_OK")
</pallas_src>

<mosaic_0001>
module attributes {stable_mosaic.version = 11 : i64} {
  func.func @kernel(%arg0: memref<2x256xf32, #tpu.memory_space<vmem>>, %arg1: memref<256x256xf32, #tpu.memory_space<vmem>>, %arg2: memref<1x256xf32, #tpu.memory_space<vmem>>, %arg3: memref<1x256xf32, #tpu.memory_space<vmem>>, %arg4: memref<1x256xf32, #tpu.memory_space<vmem>>, %arg5: memref<256x256xf32, #tpu.memory_space<vmem>>, %arg6: memref<1x256xf32, #tpu.memory_space<vmem>>, %arg7: memref<1x256xf32, #tpu.memory_space<vmem>>, %arg8: memref<1x256xf32, #tpu.memory_space<vmem>>, %arg9: memref<2x256xf32, #tpu.memory_space<vmem>>) attributes {dimension_semantics = [], scalar_prefetch = 0 : i64, scratch_operands = 0 : i64, tpu.core_type = #tpu.core_type<tc>} {
    %c0 = arith.constant 0 : index
    %c0_0 = arith.constant 0 : index
    %0 = vector.load %arg0[%c0, %c0_0] : memref<2x256xf32, #tpu.memory_space<vmem>>, vector<2x256xf32>
    %c0_1 = arith.constant 0 : index
    %c0_2 = arith.constant 0 : index
    %1 = vector.load %arg1[%c0_1, %c0_2] : memref<256x256xf32, #tpu.memory_space<vmem>>, vector<256x256xf32>
    %cst = arith.constant dense<0.000000e+00> : vector<2x256xf32>
    %2 = tpu.matmul %0, %1, %cst {dimension_numbers = #tpu.dot_dimension_numbers<[1], [0], [0], [1], [0, 0, 1, 1], [], []>} : vector<2x256xf32>, vector<256x256xf32>, vector<2x256xf32> -> vector<2x256xf32>
    %c0_3 = arith.constant 0 : index
    %c0_4 = arith.constant 0 : index
    %3 = vector.load %arg2[%c0_3, %c0_4] : memref<1x256xf32, #tpu.memory_space<vmem>>, vector<1x256xf32>
    %4 = vector.broadcast %3 : vector<1x256xf32> to vector<2x256xf32>
    %5 = arith.addf %2, %4 : vector<2x256xf32>
    %c0_5 = arith.constant 0 : index
    %c0_6 = arith.constant 0 : index
    %6 = vector.load %arg3[%c0_5, %c0_6] : memref<1x256xf32, #tpu.memory_space<vmem>>, vector<1x256xf32>
    %c0_7 = arith.constant 0 : index
    %c0_8 = arith.constant 0 : index
    %7 = vector.load %arg4[%c0_7, %c0_8] : memref<1x256xf32, #tpu.memory_space<vmem>>, vector<1x256xf32>
    %cst_9 = arith.constant dense<0.000000e+00> : vector<2xf32>
    %8 = vector.multi_reduction <add>, %5, %cst_9 [1] : vector<2x256xf32> to vector<2xf32>
    %9 = vector.shape_cast %8 : vector<2xf32> to vector<2x1xf32>
    %10 = arith.mulf %5, %5 : vector<2x256xf32>
    %cst_10 = arith.constant dense<0.000000e+00> : vector<2xf32>
    %11 = vector.multi_reduction <add>, %10, %cst_10 [1] : vector<2x256xf32> to vector<2xf32>
    %12 = vector.shape_cast %11 : vector<2xf32> to vector<2x1xf32>
    %cst_11 = arith.constant 0.00595238106 : f32
    %13 = vector.broadcast %cst_11 : f32 to vector<2x1xf32>
    %14 = arith.mulf %9, %13 : vector<2x1xf32>
    %cst_12 = arith.constant 0.00595238106 : f32
    %15 = vector.broadcast %cst_12 : f32 to vector<2x1xf32>
    %16 = arith.mulf %12, %15 : vector<2x1xf32>
    %17 = arith.mulf %14, %14 : vector<2x1xf32>
    %18 = arith.subf %16, %17 : vector<2x1xf32>
    %19 = vector.broadcast %14 : vector<2x1xf32> to vector<2x256xf32>
    %20 = arith.subf %5, %19 : vector<2x256xf32>
    %cst_13 = arith.constant 9.99999974E-6 : f32
    %21 = vector.broadcast %cst_13 : f32 to vector<2x1xf32>
    %22 = arith.addf %18, %21 : vector<2x1xf32>
    %23 = math.rsqrt %22 : vector<2x1xf32>
    %24 = vector.broadcast %23 : vector<2x1xf32> to vector<2x256xf32>
    %25 = arith.mulf %20, %24 : vector<2x256xf32>
    %26 = vector.broadcast %6 : vector<1x256xf32> to vector<2x256xf32>
    %27 = arith.mulf %25, %26 : vector<2x256xf32>
    %28 = vector.broadcast %7 : vector<1x256xf32> to vector<2x256xf32>
    %29 = arith.addf %27, %28 : vector<2x256xf32>
    %cst_14 = arith.constant 0.000000e+00 : f32
    %30 = vector.broadcast %cst_14 : f32 to vector<2x256xf32>
    %31 = arith.maximumf %29, %30 : vector<2x256xf32>
    %c0_15 = arith.constant 0 : index
    %c0_16 = arith.constant 0 : index
    %32 = vector.load %arg5[%c0_15, %c0_16] : memref<256x256xf32, #tpu.memory_space<vmem>>, vector<256x256xf32>
    %cst_17 = arith.constant dense<0.000000e+00> : vector<2x256xf32>
    %33 = tpu.matmul %31, %32, %cst_17 {dimension_numbers = #tpu.dot_dimension_numbers<[1], [0], [0], [1], [0, 0, 1, 1], [], []>} : vector<2x256xf32>, vector<256x256xf32>, vector<2x256xf32> -> vector<2x256xf32>
    %c0_18 = arith.constant 0 : index
    %c0_19 = arith.constant 0 : index
    %34 = vector.load %arg6[%c0_18, %c0_19] : memref<1x256xf32, #tpu.memory_space<vmem>>, vector<1x256xf32>
    %35 = vector.broadcast %34 : vector<1x256xf32> to vector<2x256xf32>
    %36 = arith.addf %33, %35 : vector<2x256xf32>
    %c0_20 = arith.constant 0 : index
    %c0_21 = arith.constant 0 : index
    %37 = vector.load %arg7[%c0_20, %c0_21] : memref<1x256xf32, #tpu.memory_space<vmem>>, vector<1x256xf32>
    %c0_22 = arith.constant 0 : index
    %c0_23 = arith.constant 0 : index
    %38 = vector.load %arg8[%c0_22, %c0_23] : memref<1x256xf32, #tpu.memory_space<vmem>>, vector<1x256xf32>
    %cst_24 = arith.constant dense<0.000000e+00> : vector<2xf32>
    %39 = vector.multi_reduction <add>, %36, %cst_24 [1] : vector<2x256xf32> to vector<2xf32>
    %40 = vector.shape_cast %39 : vector<2xf32> to vector<2x1xf32>
    %41 = arith.mulf %36, %36 : vector<2x256xf32>
    %cst_25 = arith.constant dense<0.000000e+00> : vector<2xf32>
    %42 = vector.multi_reduction <add>, %41, %cst_25 [1] : vector<2x256xf32> to vector<2xf32>
    %43 = vector.shape_cast %42 : vector<2xf32> to vector<2x1xf32>
    %cst_26 = arith.constant 0.00595238106 : f32
    %44 = vector.broadcast %cst_26 : f32 to vector<2x1xf32>
    %45 = arith.mulf %40, %44 : vector<2x1xf32>
    %cst_27 = arith.constant 0.00595238106 : f32
    %46 = vector.broadcast %cst_27 : f32 to vector<2x1xf32>
    %47 = arith.mulf %43, %46 : vector<2x1xf32>
    %48 = arith.mulf %45, %45 : vector<2x1xf32>
    %49 = arith.subf %47, %48 : vector<2x1xf32>
    %50 = vector.broadcast %45 : vector<2x1xf32> to vector<2x256xf32>
    %51 = arith.subf %36, %50 : vector<2x256xf32>
    %cst_28 = arith.constant 9.99999974E-6 : f32
    %52 = vector.broadcast %cst_28 : f32 to vector<2x1xf32>
    %53 = arith.addf %49, %52 : vector<2x1xf32>
    %54 = math.rsqrt %53 : vector<2x1xf32>
    %55 = vector.broadcast %54 : vector<2x1xf32> to vector<2x256xf32>
    %56 = arith.mulf %51, %55 : vector<2x256xf32>
    %57 = vector.broadcast %37 : vector<1x256xf32> to vector<2x256xf32>
    %58 = arith.mulf %56, %57 : vector<2x256xf32>
    %59 = vector.broadcast %38 : vector<1x256xf32> to vector<2x256xf32>
    %60 = arith.addf %58, %59 : vector<2x256xf32>
    %61 = arith.addf %60, %0 : vector<2x256xf32>
    %cst_29 = arith.constant 0.000000e+00 : f32
    %62 = vector.broadcast %cst_29 : f32 to vector<2x256xf32>
    %63 = arith.maximumf %61, %62 : vector<2x256xf32>
    %c0_30 = arith.constant 0 : index
    %c0_31 = arith.constant 0 : index
    %64 = vector.load %arg9[%c0_30, %c0_31] : memref<2x256xf32, #tpu.memory_space<vmem>>, vector<2x256xf32>
    tpu.vector_store %arg9[%c0_30, %c0_31], %63 {strides = array<i32>} : memref<2x256xf32, #tpu.memory_space<vmem>>, vector<2x256xf32>,
    return
  }
}

</mosaic_0001>

<bundles_post_ra>
// kernel: tile.18
= control target key start
LH: loop header
LB: loop body
LE: loop exit
PB: predicated region body
PF: predicated region fallthrough
CT: control target
= control target key end

     0   :  { %s52_s0 = inlined_call_operand.vmem [shape: f32[4], index: 0, kind: input, shape index: {}]   ;;  %s53_s1 = inlined_call_operand.vmem [shape: f32[42,4], index: 1, kind: output, shape index: {}]  }
   0x1   :  { %v4_v0 = vld [vmem:[%s52_s0] ss:$0 sm:$0xff] }
   0x2   :  { %5 = vst [vmem:[%s53_s1] sm:$0xff] %v4_v0  ;;  %16 = vst [vmem:[%s53_s1 + $0x8] sm:$0xff] %v4_v0 }
   0x3   :  { %17 = vst [vmem:[%s53_s1 + $0x10] sm:$0xff] %v4_v0  ;;  %18 = vst [vmem:[%s53_s1 + $0x18] sm:$0xff] %v4_v0 }
   0x4   :  { %19 = vst [vmem:[%s53_s1 + $0x20] sm:$0xff] %v4_v0  ;;  %20 = vst [vmem:[%s53_s1 + $0x28] sm:$0xff] %v4_v0 }

// kernel: tile.19
= control target key start
LH: loop header
LB: loop body
LE: loop exit
PB: predicated region body
PF: predicated region fallthrough
CT: control target
= control target key end

     0   :  { %s309_s10 = smov 124   ;;  %s310_s11 = smov 116   ;;  %vm7_vm0 = vcmask 31744   ;;  %vm5_vm1 = vcmask 1041409   ;;  %vm13_vm2 = vcmask 1048544   ;;  %vm19_vm3 = vcmask 1015744   ;;  %s489_s0 = inlined_call_operand.vmem [shape: f32[42,4], index: 0, kind: input, shape index: {}]   ;;  %s490_s1 = inlined_call_operand.vmem [shape: f32[168], index: 1, kind: output, shape index: {}]  }
   0x1   :  { %v238_v0 = vld [vmem:[%s489_s0 + $0x1f] sm:$0x1]   ;;  %v240_v1 = vld [vmem:[%s489_s0 + $0x1d] sm:$0x1]   ;;  %v239_v2 = vld [vmem:[%s489_s0 + $0x1e] sm:$0x1]  }
   0x2   :  { %11 = vrot.lane.b32.xlu0 %v238_v0, %s309_s10  ;;  %23 = vrot.lane.b32.xlu1 %v240_v1, %s310_s11  ;;  %v241_v3 = vld [vmem:[%s489_s0 + $0x1c] sm:$0x1]   ;;  %s311_s16 = smov 120   ;;  %s312_s17 = smov 112   ;;  %v242_v4 = vld [vmem:[%s489_s0 + $0x1b] sm:$0x1]  }
   0x3   :  { %v243_v5 = vld [vmem:[%s489_s0 + $0x1a] sm:$0x1]   ;;  %s313_s22 = smov 108   ;;  %s314_s23 = smov 104   ;;  %v244_v6 = vld [vmem:[%s489_s0 + $0x19] sm:$0x1]  }
   0x4   :  { %v245_v7 = vld [vmem:[%s489_s0 + $0x18] sm:$0x1]   ;;  %s315_s28 = smov 100   ;;  %s316_s29 = smov 96   ;;  %v246_v8 = vld [vmem:[%s489_s0 + $0x17] sm:$0x1]  }
   0x5   :  { %v247_v9 = vld [vmem:[%s489_s0 + $0x16] sm:$0x1]   ;;  %s317_s5 = smov 92   ;;  %s318_s6 = smov 88   ;;  %v248_v10 = vld [vmem:[%s489_s0 + $0x15] sm:$0x1]  }
   0x6   :  { %17 = vrot.lane.b32.xlu0 %v239_v2, %s311_s16  ;;  %29 = vrot.lane.b32.xlu1 %v241_v3, %s312_s17  ;;  %v249_v11 = vld [vmem:[%s489_s0 + $0x14] sm:$0x1]   ;;  %v2_v12 = vld [vmem:[%s489_s0] sm:$0x1]   ;;  %s319_s15 = smov 84   ;;  %s320_s16 = smov 80  }
   0x7   :  { %v237_v13 = vld [vmem:[%s489_s0 + $0x1f] sm:$0x2]   ;;  %v250_v15 = vld [vmem:[%s489_s0 + $0x13] sm:$0x1]   ;;  %v251_v16 = vld [vmem:[%s489_s0 + $0x12] sm:$0x1]  }
   0x8   :  { %v6_v14 = vsel %vm5_vm1, %v237_v13, %v2_v12  ;;  %s321_s21 = smov 76   ;;  %v252_v17 = vld [vmem:[%s489_s0 + $0x11] sm:$0x1]   ;;  %v253_v18 = vld [vmem:[%s489_s0 + $0x10] sm:$0x1]   ;;  %s323_s27 = smov 68  }
   0x9   :  { %8 = vst.msk [vmem:[#allocation0] sm:$0x3] %vm7_vm0, %v6_v14   ;;  %v254_v19 = vld [vmem:[%s489_s0 + $0xf] sm:$0x1]   ;;  %v255_v20 = vld [vmem:[%s489_s0 + $0xe] sm:$0x1]  }
   0xa   :  { %35 = vrot.lane.b32.xlu0 %v242_v4, %s313_s22  ;;  %41 = vrot.lane.b32.xlu1 %v243_v5, %s314_s23  ;;  %s322_s22 = smov 72   ;;  %s325_s4 = smov 60   ;;  %v256_v21 = vld [vmem:[%s489_s0 + $0xd] sm:$0x1]   ;;  %v257_v22 = vld [vmem:[%s489_s0 + $0xc] sm:$0x1]  }
   0xb   :  { %s327_s10 = smov 52   ;;  %s328_s11 = smov 48   ;;  %v258_v23 = vld [vmem:[%s489_s0 + $0xb] sm:$0x1]   ;;  %v259_v24 = vld [vmem:[%s489_s0 + $0xa] sm:$0x1]  }
   0xc   :  { %v260_v25 = vld [vmem:[%s489_s0 + $0x9] sm:$0x1]   ;;  %v262_v27 = vld [vmem:[%s489_s0 + $0x8] sm:$0x1]   ;;  %s329_s24 = smov 44   ;;  %s330_s25 = smov 40  }
   0xd   :  { %v261_v26 = vld [vmem:[%s489_s0 + $0x28] sm:$0x2]   ;;  %v263_v28 = vld [vmem:[%s489_s0 + $0x27] sm:$0x2]   ;;  %v264_v31 = vld [vmem:[%s489_s0 + $0x7] sm:$0x1]  }
   0xe   :  { %47 = vrot.lane.b32.xlu0 %v244_v6, %s315_s28  ;;  %53 = vrot.lane.b32.xlu1 %v245_v7, %s316_s29  ;;  %s324_s28 = smov 64   ;;  %v146_v29 = vsel %vm5_vm1, %v261_v26, %v260_v25  ;;  %v156_v30 = vsel %vm5_vm1, %v263_v28, %v262_v27  ;;  %v265_v32 = vld [vmem:[%s489_s0 + $0x26] sm:$0x2]   ;;  %v266_v33 = vld [vmem:[%s489_s0 + $0x6] sm:$0x1]   ;;  %s336_s26 = smov 16  }
   0xf   :  { %v267_v34 = vld [vmem:[%s489_s0 + $0x25] sm:$0x2]   ;;  %v166_v35 = vsel %vm5_vm1, %v265_v32, %v264_v31  ;;  %v268_v37 = vld [vmem:[%s489_s0 + $0x5] sm:$0x1]   ;;  %v270_v39 = vld [vmem:[%s489_s0 + $0x4] sm:$0x1]  }
  0x10   :  { %v176_v36 = vsel %vm5_vm1, %v267_v34, %v266_v33  ;;  %v269_v38 = vld [vmem:[%s489_s0 + $0x24] sm:$0x2]   ;;  %v271_v40 = vld [vmem:[%s489_s0 + $0x23] sm:$0x2]   ;;  %v272_v43 = vld [vmem:[%s489_s0 + $0x3] sm:$0x1]  }
  0x11   :  { %v186_v41 = vsel %vm5_vm1, %v269_v38, %v268_v37  ;;  %v196_v42 = vsel %vm5_vm1, %v271_v40, %v270_v39  ;;  %v273_v44 = vld [vmem:[%s489_s0 + $0x22] sm:$0x2]   ;;  %v274_v45 = vld [vmem:[%s489_s0 + $0x2] sm:$0x1]   ;;  %v276_v49 = vld [vmem:[%s489_s0 + $0x1] sm:$0x1]  }
  0x12   :  { %59 = vrot.lane.b32.xlu0 %v246_v8, %s317_s5  ;;  %65 = vrot.lane.b32.xlu1 %v247_v9, %s318_s6  ;;  %s326_s5 = smov 56   ;;  %s332_s6 = smov 32   ;;  %v275_v46 = vld [vmem:[%s489_s0 + $0x21] sm:$0x2]   ;;  %v206_v47 = vsel %vm5_vm1, %v273_v44, %v272_v43  ;;  %v277_v50 = vld [vmem:[%s489_s0 + $0x20] sm:$0x2]  }
  0x13   :  { %v216_v48 = vsel %vm5_vm1, %v275_v46, %v274_v45  ;;  %s337_s0 = smov 12   ;;  %s338_s2 = smov 8   ;;  %v226_v51 = vsel %vm5_vm1, %v277_v50, %v276_v49  ;;  %vm25_vm4 = vcmask 982944   ;;  %vm31_vm5 = vcmask 950144  }
  0x14   :  { %s339_s3 = smov 4   ;;  %vm37_vm6 = vcmask 917344   ;;  %vm43_vm7 = vcmask 884544   ;;  %vm49_vm8 = vcmask 851744   ;;  %vm55_vm9 = vcmask 818944  }
  0x15   :  { %vm61_vm10 = vcmask 786144   ;;  %vm67_vm11 = vcmask 753344   ;;  %vm73_vm12 = vcmask 720544   ;;  %vm79_vm13 = vcmask 687744  }
  0x16   :  { %71 = vrot.lane.b32.xlu0 %v248_v10, %s319_s15  ;;  %77 = vrot.lane.b32.xlu1 %v249_v11, %s320_s16  ;;  %s333_s15 = smov 28   ;;  %s334_s16 = smov 24   ;;  %vm85_vm14 = vcmask 654944   ;;  %vm91_vm15 = vcmask 622144   ;;  %vm97_vm0 = vcmask 589344   ;;  %vm103_vm1 = vcmask 556544  }
  0x1a   :  { %83 = vrot.lane.b32.xlu0 %v250_v15, %s321_s21  ;;  %89 = vrot.lane.b32.xlu1 %v251_v16, %s322_s22 }
  0x1e   :  { %95 = vrot.lane.b32.xlu0 %v252_v17, %s323_s27  ;;  %101 = vrot.lane.b32.xlu1 %v253_v18, %s324_s28 }
  0x22   :  { %107 = vrot.lane.b32.xlu0 %v254_v19, %s325_s4  ;;  %113 = vrot.lane.b32.xlu1 %v255_v20, %s326_s5  ;;  %s331_s5 = smov 36  }
  0x26   :  { %119 = vrot.lane.b32.xlu0 %v256_v21, %s327_s10  ;;  %125 = vrot.lane.b32.xlu1 %v257_v22, %s328_s11 }
  0x2a   :  { %131 = vrot.lane.b32.xlu0 %v258_v23, %s329_s24  ;;  %137 = vrot.lane.b32.xlu1 %v259_v24, %s330_s25  ;;  %s335_s25 = smov 20  }
  0x2e   :  { %147 = vrot.lane.b32.xlu0 %v146_v29, %s331_s5  ;;  %157 = vrot.lane.b32.xlu1 %v156_v30, %s332_s6 }
  0x32   :  { %167 = vrot.lane.b32.xlu0 %v166_v35, %s333_s15  ;;  %177 = vrot.lane.b32.xlu1 %v176_v36, %s334_s16 }
  0x36   :  { %187 = vrot.lane.b32.xlu0 %v186_v41, %s335_s25  ;;  %197 = vrot.lane.b32.xlu1 %v196_v42, %s336_s26 }
  0x3a   :  { %207 = vrot.lane.b32.xlu0 %v206_v47, %s337_s0  ;;  %217 = vrot.lane.b32.xlu1 %v216_v48, %s338_s2 }
  0x3e   :  { %227 = vrot.lane.b32.xlu0 %v226_v51, %s339_s3 }
  0x74   :  { %v12_v52 = vpop.permute.xlu0 %11   ;;  %v24_v53 = vpop.permute.xlu1 %23  }
  0x75   :  { %14 = vst.msk [vmem:[#allocation0] sm:$0x1] %vm13_vm2, %v12_v52   ;;  %vm109_vm2 = vcmask 523744  }
  0x78   :  { %v18_v54 = vpop.permute.xlu0 %17   ;;  %v30_v55 = vpop.permute.xlu1 %29  }
  0x79   :  { %20 = vst.msk [vmem:[#allocation0] sm:$0x1] %vm19_vm3, %v18_v54   ;;  %vm115_vm3 = vcmask 490944  }
  0x7a   :  { %26 = vst.msk [vmem:[#allocation0] sm:$0x1] %vm25_vm4, %v24_v53   ;;  %vm121_vm4 = vcmask 458144  }
  0x7b   :  { %32 = vst.msk [vmem:[#allocation0] sm:$0x1] %vm31_vm5, %v30_v55   ;;  %vm127_vm5 = vcmask 425344  }
  0x7c   :  { %v36_v56 = vpop.permute.xlu0 %35   ;;  %v42_v57 = vpop.permute.xlu1 %41  }
  0x7d   :  { %38 = vst.msk [vmem:[#allocation0] sm:$0x1] %vm37_vm6, %v36_v56   ;;  %vm133_vm6 = vcmask 392544  }
  0x7e   :  { %44 = vst.msk [vmem:[#allocation0] sm:$0x1] %vm43_vm7, %v42_v57   ;;  %vm139_vm7 = vcmask 359744  }
  0x80   :  { %v48_v58 = vpop.permute.xlu0 %47   ;;  %v54_v59 = vpop.permute.xlu1 %53  }
  0x81   :  { %50 = vst.msk [vmem:[#allocation0] sm:$0x1] %vm49_vm8, %v48_v58   ;;  %vm149_vm8 = vcmask 326944  }
  0x82   :  { %56 = vst.msk [vmem:[#allocation0] sm:$0x1] %vm55_vm9, %v54_v59   ;;  %vm159_vm9 = vcmask 294144  }
  0x84   :  { %v60_v60 = vpop.permute.xlu0 %59   ;;  %v66_v61 = vpop.permute.xlu1 %65  }
  0x85   :  { %62 = vst.msk [vmem:[#allocation0] sm:$0x1] %vm61_vm10, %v60_v60   ;;  %vm169_vm10 = vcmask 261344  }
  0x86   :  { %68 = vst.msk [vmem:[#allocation0] sm:$0x1] %vm67_vm11, %v66_v61   ;;  %vm179_vm11 = vcmask 228544  }
  0x88   :  { %v72_v62 = vpop.permute.xlu0 %71   ;;  %v78_v63 = vpop.permute.xlu1 %77  }
  0x89   :  { %74 = vst.msk [vmem:[#allocation0] sm:$0x1] %vm73_vm12, %v72_v62   ;;  %vm189_vm12 = vcmask 195744  }
  0x8a   :  { %80 = vst.msk [vmem:[#allocation0] sm:$0x1] %vm79_vm13, %v78_v63   ;;  %vm199_vm13 = vcmask 162944  }
  0x8c   :  { %v84_v0 = vpop.permute.xlu0 %83   ;;  %v90_v1 = vpop.permute.xlu1 %89  }
  0x8d   :  { %86 = vst.msk [vmem:[#allocation0] sm:$0x1] %vm85_vm14, %v84_v0   ;;  %vm209_vm14 = vcmask 130144  }
  0x8e   :  { %92 = vst.msk [vmem:[#allocation0] sm:$0x1] %vm91_vm15, %v90_v1   ;;  %vm219_vm15 = vcmask 97344  }
  0x90   :  { %v96_v2 = vpop.permute.xlu0 %95   ;;  %v102_v3 = vpop.permute.xlu1 %101  }
  0x91   :  { %98 = vst.msk [vmem:[#allocation0] sm:$0x1] %vm97_vm0, %v96_v2   ;;  %vm229_vm0 = vcmask 64544  }
  0x92   :  { %104 = vst.msk [vmem:[#allocation0] sm:$0x1] %vm103_vm1, %v102_v3  }
  0x94   :  { %v108_v4 = vpop.permute.xlu0 %107   ;;  %v114_v5 = vpop.permute.xlu1 %113  }
  0x95   :  { %110 = vst.msk [vmem:[#allocation0] sm:$0x1] %vm109_vm2, %v108_v4  }
  0x96   :  { %116 = vst.msk [vmem:[#allocation0] sm:$0x1] %vm115_vm3, %v114_v5  }
  0x98   :  { %v120_v6 = vpop.permute.xlu0 %119   ;;  %v126_v7 = vpop.permute.xlu1 %125  }
  0x99   :  { %122 = vst.msk [vmem:[#allocation0] sm:$0x1] %vm121_vm4, %v120_v6  }
  0x9a   :  { %128 = vst.msk [vmem:[#allocation0] sm:$0x1] %vm127_vm5, %v126_v7  }
  0x9c   :  { %v132_v8 = vpop.permute.xlu0 %131   ;;  %v138_v9 = vpop.permute.xlu1 %137  }
  0x9d   :  { %134 = vst.msk [vmem:[#allocation0] sm:$0x1] %vm133_vm6, %v132_v8  }
  0x9e   :  { %140 = vst.msk [vmem:[#allocation0] sm:$0x1] %vm139_vm7, %v138_v9  }
  0xa0   :  { %v148_v10 = vpop.permute.xlu0 %147   ;;  %v158_v11 = vpop.permute.xlu1 %157  }
  0xa1   :  { %150 = vst.msk [vmem:[#allocation0] sm:$0x3] %vm149_vm8, %v148_v10  }
  0xa2   :  { %160 = vst.msk [vmem:[#allocation0] sm:$0x3] %vm159_vm9, %v158_v11  }
  0xa4   :  { %v168_v12 = vpop.permute.xlu0 %167   ;;  %v178_v13 = vpop.permute.xlu1 %177  }
  0xa5   :  { %170 = vst.msk [vmem:[#allocation0] sm:$0x3] %vm169_vm10, %v168_v12  }
  0xa6   :  { %180 = vst.msk [vmem:[#allocation0] sm:$0x3] %vm179_vm11, %v178_v13  }
  0xa8   :  { %v188_v14 = vpop.permute.xlu0 %187   ;;  %v198_v15 = vpop.permute.xlu1 %197  }
  0xa9   :  { %190 = vst.msk [vmem:[#allocation0] sm:$0x3] %vm189_vm12, %v188_v14  }
  0xaa   :  { %200 = vst.msk [vmem:[#allocation0] sm:$0x3] %vm199_vm13, %v198_v15  }
  0xac   :  { %v208_v16 = vpop.permute.xlu0 %207   ;;  %v218_v17 = vpop.permute.xlu1 %217  }
  0xad   :  { %210 = vst.msk [vmem:[#allocation0] sm:$0x3] %vm209_vm14, %v208_v16  }
  0xae   :  { %220 = vst.msk [vmem:[#allocation0] sm:$0x3] %vm219_vm15, %v218_v17  }
  0xb0   :  { %v228_v18 = vpop.permute.xlu0 %227  }
  0xb1   :  { %230 = vst.msk [vmem:[#allocation0] sm:$0x3] %vm229_vm0, %v228_v18  }
  0xb8   :  { %v234_v19 = vld [vmem:[#allocation0] sm:$0x3] }
  0xb9   :  { %236 = vst [vmem:[%s490_s1] sm:$0x3] %v234_v19 }

// kernel: residual_block_ln.1
= control target key start
LH: loop header
LB: loop body
LE: loop exit
PB: predicated region body
PF: predicated region fallthrough
CT: control target
= control target key end

     0   :  { %vm193_vm0 = vcmask 1041408   ;;  %s1099_s1 = inlined_call_operand.vmem [shape: f32[256,256], index: 1, kind: input, shape index: {}]   ;;  %s1100_s0 = inlined_call_operand.vmem [shape: f32[2,256], index: 0, kind: input, shape index: {}]   ;;  %s1101_s5 = inlined_call_operand.vmem [shape: f32[256,256], index: 5, kind: input, shape index: {}]   ;;  %s1102_s2 = inlined_call_operand.vmem [shape: f32[1,256], index: 2, kind: input, shape index: {}]   ;;  %s1103_s3 = inlined_call_operand.vmem [shape: f32[1,256], index: 3, kind: input, shape index: {}]   ;;  %s1104_s4 = inlined_call_operand.vmem [shape: f32[1,256], index: 4, kind: input, shape index: {}]   ;;  %s1105_s6 = inlined_call_operand.vmem [shape: f32[1,256], index: 6, kind: input, shape index: {}]   ;;  %s1106_s7 = inlined_call_operand.vmem [shape: f32[1,256], index: 7, kind: input, shape index: {}]   ;;  %s1107_s8 = inlined_call_operand.vmem [shape: f32[1,256], index: 8, kind: input, shape index: {}]   ;;  %s1108_s9 = inlined_call_operand.vmem [shape: f32[2,256], index: 9, kind: output, shape index: {}]  }
   0x1   :  { %v34_v0 = vld [vmem:[%s1099_s1 + $0x8] sm:$0xff]  ;;  %v36_v1 = vld [vmem:[%s1099_s1 + $0x18] sm:$0xff]  ;;  %v33_v2 = vld [vmem:[%s1099_s1] sm:$0xff] }
   0x2   :  { %v463_v3 = vpack.c.bf16 %v36_v1, %v34_v0  ;;  %v35_v4 = vld [vmem:[%s1099_s1 + $0x10] sm:$0xff]  ;;  %v38_v5 = vld [vmem:[%s1099_s1 + $0x28] sm:$0xff]  ;;  %v40_v6 = vld [vmem:[%s1099_s1 + $0x38] sm:$0xff] }
   0x3   :  { %v465_v7 = vpack.c.bf16 %v35_v4, %v33_v2  ;;  %v467_v8 = vpack.c.bf16 %v40_v6, %v38_v5  ;;  %v37_v9 = vld [vmem:[%s1099_s1 + $0x20] sm:$0xff]  ;;  %v39_v10 = vld [vmem:[%s1099_s1 + $0x30] sm:$0xff]  ;;  %v42_v11 = vld [vmem:[%s1099_s1 + $0x48] sm:$0xff] }
   0x4   :  { %464 = vmatprep.subr.bf16.mxu0 %v463_v3  ;;  %v44_v12 = vld [vmem:[%s1099_s1 + $0x58] sm:$0xff]  ;;  %v469_v13 = vpack.c.bf16 %v39_v10, %v37_v9  ;;  %v41_v15 = vld [vmem:[%s1099_s1 + $0x40] sm:$0xff]  ;;  %v43_v16 = vld [vmem:[%s1099_s1 + $0x50] sm:$0xff] }
   0x5   :  { %466 = vmatpush1.bf16.msra.mxu0 %v465_v7  ;;  %v471_v14 = vpack.c.bf16 %v44_v12, %v42_v11  ;;  %v46_v17 = vld [vmem:[%s1099_s1 + $0x68] sm:$0xff]  ;;  %v48_v18 = vld [vmem:[%s1099_s1 + $0x78] sm:$0xff]  ;;  %v473_v19 = vpack.c.bf16 %v43_v16, %v41_v15  ;;  %v45_v21 = vld [vmem:[%s1099_s1 + $0x60] sm:$0xff] }
   0x6   :  { %468 = vmatprep.subr.bf16.mxu0 %v467_v8  ;;  %v475_v20 = vpack.c.bf16 %v48_v18, %v46_v17  ;;  %v47_v22 = vld [vmem:[%s1099_s1 + $0x70] sm:$0xff]  ;;  %v50_v23 = vld [vmem:[%s1099_s1 + $0x88] sm:$0xff]  ;;  %v52_v24 = vld [vmem:[%s1099_s1 + $0x98] sm:$0xff] }
   0x7   :  { %v477_v25 = vpack.c.bf16 %v47_v22, %v45_v21  ;;  %v479_v26 = vpack.c.bf16 %v52_v24, %v50_v23  ;;  %v49_v27 = vld [vmem:[%s1099_s1 + $0x80] sm:$0xff]  ;;  %v51_v28 = vld [vmem:[%s1099_s1 + $0x90] sm:$0xff]  ;;  %v54_v29 = vld [vmem:[%s1099_s1 + $0xa8] sm:$0xff] }
   0x8   :  { %v56_v30 = vld [vmem:[%s1099_s1 + $0xb8] sm:$0xff]  ;;  %v481_v31 = vpack.c.bf16 %v51_v28, %v49_v27  ;;  %v53_v33 = vld [vmem:[%s1099_s1 + $0xa0] sm:$0xff]  ;;  %v55_v34 = vld [vmem:[%s1099_s1 + $0xb0] sm:$0xff] }
   0x9   :  { %470 = vmatpush1.bf16.msra.mxu0 %v469_v13  ;;  %v483_v32 = vpack.c.bf16 %v56_v30, %v54_v29  ;;  %v58_v35 = vld [vmem:[%s1099_s1 + $0xc8] sm:$0xff]  ;;  %v60_v36 = vld [vmem:[%s1099_s1 + $0xd8] sm:$0xff]  ;;  %v485_v37 = vpack.c.bf16 %v55_v34, %v53_v33  ;;  %v57_v39 = vld [vmem:[%s1099_s1 + $0xc0] sm:$0xff] }
   0xa   :  { %472 = vmatprep.subr.bf16.mxu0 %v471_v14  ;;  %v487_v38 = vpack.c.bf16 %v60_v36, %v58_v35  ;;  %v59_v40 = vld [vmem:[%s1099_s1 + $0xd0] sm:$0xff]  ;;  %v732_v41 = vld.sshfl [vmem:[%s1100_s0] sm:$0x33 pattern:$0x76325410]  ;;  %v62_v42 = vld [vmem:[%s1099_s1 + $0xe8] sm:$0xff] }
   0xb   :  { %v64_v43 = vld [vmem:[%s1099_s1 + $0xf8] sm:$0xff]  ;;  %v742_v44 = vcombine.high %v732_v41, %v732_v41  ;;  %v489_v45 = vpack.c.bf16 %v59_v40, %v57_v39  ;;  %v61_v47 = vld [vmem:[%s1099_s1 + $0xe0] sm:$0xff]  ;;  %v63_v48 = vld [vmem:[%s1099_s1 + $0xf0] sm:$0xff] }
   0xc   :  { %v491_v46 = vpack.c.bf16 %v64_v43, %v62_v42  ;;  %v66_v49 = vld [vmem:[%s1099_s1 + $0x108] sm:$0xff]  ;;  %v68_v50 = vld [vmem:[%s1099_s1 + $0x118] sm:$0xff]  ;;  %v493_v51 = vpack.c.bf16 %v63_v48, %v61_v47  ;;  %v65_v53 = vld [vmem:[%s1099_s1 + $0x100] sm:$0xff] }
   0xd   :  { %474 = vmatpush1.bf16.msra.mxu0 %v473_v19  ;;  %184 = vmatprep.mubr.f32.mxu0 %v742_v44  ;;  %v495_v52 = vpack.c.bf16 %v68_v50, %v66_v49  ;;  %v67_v54 = vld [vmem:[%s1099_s1 + $0x110] sm:$0xff]  ;;  %v70_v55 = vld [vmem:[%s1099_s1 + $0x128] sm:$0xff]  ;;  %v72_v56 = vld [vmem:[%s1099_s1 + $0x138] sm:$0xff] }
   0xe   :  { %476 = vmatprep.subr.bf16.mxu0 %v475_v20  ;;  %v497_v57 = vpack.c.bf16 %v67_v54, %v65_v53  ;;  %v499_v58 = vpack.c.bf16 %v72_v56, %v70_v55  ;;  %v69_v59 = vld [vmem:[%s1099_s1 + $0x120] sm:$0xff]  ;;  %v71_v60 = vld [vmem:[%s1099_s1 + $0x130] sm:$0xff]  ;;  %v74_v61 = vld [vmem:[%s1099_s1 + $0x148] sm:$0xff] }
   0xf   :  { %v76_v62 = vld [vmem:[%s1099_s1 + $0x158] sm:$0xff]  ;;  %v501_v63 = vpack.c.bf16 %v71_v60, %v69_v59  ;;  %v73_v1 = vld [vmem:[%s1099_s1 + $0x140] sm:$0xff]  ;;  %v75_v2 = vld [vmem:[%s1099_s1 + $0x150] sm:$0xff] }
  0x10   :  { %v503_v0 = vpack.c.bf16 %v76_v62, %v74_v61  ;;  %v78_v3 = vld [vmem:[%s1099_s1 + $0x168] sm:$0xff]  ;;  %v80_v4 = vld [vmem:[%s1099_s1 + $0x178] sm:$0xff]  ;;  %v505_v5 = vpack.c.bf16 %v75_v2, %v73_v1  ;;  %v77_v7 = vld [vmem:[%s1099_s1 + $0x160] sm:$0xff] }
  0x11   :  { %478 = vmatpush1.bf16.msra.mxu0 %v477_v25  ;;  %v507_v6 = vpack.c.bf16 %v80_v4, %v78_v3  ;;  %v79_v8 = vld [vmem:[%s1099_s1 + $0x170] sm:$0xff]  ;;  %v82_v9 = vld [vmem:[%s1099_s1 + $0x188] sm:$0xff]  ;;  %v84_v10 = vld [vmem:[%s1099_s1 + $0x198] sm:$0xff] }
  0x12   :  { %480 = vmatprep.subr.bf16.mxu0 %v479_v26  ;;  %v509_v11 = vpack.c.bf16 %v79_v8, %v77_v7  ;;  %v511_v12 = vpack.c.bf16 %v84_v10, %v82_v9  ;;  %v81_v13 = vld [vmem:[%s1099_s1 + $0x180] sm:$0xff]  ;;  %v83_v14 = vld [vmem:[%s1099_s1 + $0x190] sm:$0xff]  ;;  %v86_v15 = vld [vmem:[%s1099_s1 + $0x1a8] sm:$0xff] }
  0x13   :  { %v88_v16 = vld [vmem:[%s1099_s1 + $0x1b8] sm:$0xff]  ;;  %v513_v17 = vpack.c.bf16 %v83_v14, %v81_v13  ;;  %v85_v19 = vld [vmem:[%s1099_s1 + $0x1a0] sm:$0xff]  ;;  %v87_v20 = vld [vmem:[%s1099_s1 + $0x1b0] sm:$0xff] }
  0x14   :  { %v515_v18 = vpack.c.bf16 %v88_v16, %v86_v15  ;;  %v90_v21 = vld [vmem:[%s1099_s1 + $0x1c8] sm:$0xff]  ;;  %v92_v22 = vld [vmem:[%s1099_s1 + $0x1d8] sm:$0xff]  ;;  %v517_v23 = vpack.c.bf16 %v87_v20, %v85_v19  ;;  %v89_v25 = vld [vmem:[%s1099_s1 + $0x1c0] sm:$0xff] }
  0x15   :  { %482 = vmatpush1.bf16.msra.mxu0 %v481_v31  ;;  %v519_v24 = vpack.c.bf16 %v92_v22, %v90_v21  ;;  %v91_v26 = vld [vmem:[%s1099_s1 + $0x1d0] sm:$0xff]  ;;  %v94_v27 = vld [vmem:[%s1099_s1 + $0x1e8] sm:$0xff]  ;;  %v96_v28 = vld [vmem:[%s1099_s1 + $0x1f8] sm:$0xff] }
  0x16   :  { %484 = vmatprep.subr.bf16.mxu0 %v483_v32  ;;  %v521_v29 = vpack.c.bf16 %v91_v26, %v89_v25  ;;  %v523_v30 = vpack.c.bf16 %v96_v28, %v94_v27  ;;  %v93_v31 = vld [vmem:[%s1099_s1 + $0x1e0] sm:$0xff]  ;;  %v95_v32 = vld [vmem:[%s1099_s1 + $0x1f0] sm:$0xff]  ;;  %v245_v34 = vld [vmem:[%s1101_s5 + $0x8] sm:$0xff]  ;;  %v99_v26 = vlaneseq }
  0x17   :  { %v525_v33 = vpack.c.bf16 %v95_v32, %v93_v31  ;;  %v247_v35 = vld [vmem:[%s1101_s5 + $0x18] sm:$0xff]  ;;  %v244_v36 = vld [vmem:[%s1101_s5] sm:$0xff]  ;;  %v249_v39 = vld [vmem:[%s1101_s5 + $0x28] sm:$0xff] }
  0x18   :  { %v251_v40 = vld [vmem:[%s1101_s5 + $0x38] sm:$0xff]  ;;  %v253_v47 = vld [vmem:[%s1101_s5 + $0x48] sm:$0xff]  ;;  %v100_v27 = vshrl.u32 %v99_v26, 7 }
  0x19   :  { %486 = vmatpush1.bf16.msra.mxu0 %v485_v37  ;;  %v527_v37 = vpack.c.bf16 %v247_v35, %v245_v34  ;;  %v531_v43 = vpack.c.bf16 %v251_v40, %v249_v39  ;;  %v255_v48 = vld [vmem:[%s1101_s5 + $0x58] sm:$0xff]  ;;  %v257_v53 = vld [vmem:[%s1101_s5 + $0x68] sm:$0xff] }
  0x1a   :  { %488 = vmatprep.subr.bf16.mxu0 %v487_v38  ;;  %v246_v38 = vld [vmem:[%s1101_s5 + $0x10] sm:$0xff]  ;;  %v535_v50 = vpack.c.bf16 %v255_v48, %v253_v47  ;;  %v259_v54 = vld [vmem:[%s1101_s5 + $0x78] sm:$0xff]  ;;  %v261_v59 = vld [vmem:[%s1101_s5 + $0x88] sm:$0xff]  ;;  %v956_v28 = vsub.s32 0, %v100_v27 }
  0x1b   :  { %v529_v42 = vpack.c.bf16 %v246_v38, %v244_v36  ;;  %528 = vmatprep.subr.bf16.mxu1 %v527_v37  ;;  %v539_v56 = vpack.c.bf16 %v259_v54, %v257_v53  ;;  %v263_v60 = vld [vmem:[%s1101_s5 + $0x98] sm:$0xff]  ;;  %v265_v1 = vld [vmem:[%s1101_s5 + $0xa8] sm:$0xff] }
  0x1c   :  { %v543_v62 = vpack.c.bf16 %v263_v60, %v261_v59  ;;  %v267_v2 = vld [vmem:[%s1101_s5 + $0xb8] sm:$0xff]  ;;  %v269_v7 = vld [vmem:[%s1101_s5 + $0xc8] sm:$0xff] }
  0x1d   :  { %490 = vmatpush1.bf16.msra.mxu0 %v489_v45  ;;  %v248_v45 = vld [vmem:[%s1101_s5 + $0x20] sm:$0xff]  ;;  %530 = vmatpush1.bf16.msra.mxu1 %v529_v42  ;;  %v547_v4 = vpack.c.bf16 %v267_v2, %v265_v1  ;;  %v271_v8 = vld [vmem:[%s1101_s5 + $0xd8] sm:$0xff]  ;;  %v273_v13 = vld [vmem:[%s1101_s5 + $0xe8] sm:$0xff] }
  0x1e   :  { %492 = vmatprep.subr.bf16.mxu0 %v491_v46  ;;  %v250_v46 = vld [vmem:[%s1101_s5 + $0x30] sm:$0xff]  ;;  %532 = vmatprep.subr.bf16.mxu1 %v531_v43  ;;  %v551_v10 = vpack.c.bf16 %v271_v8, %v269_v7  ;;  %v275_v14 = vld [vmem:[%s1101_s5 + $0xf8] sm:$0xff]  ;;  %v277_v19 = vld [vmem:[%s1101_s5 + $0x108] sm:$0xff] }
  0x1f   :  { %v533_v49 = vpack.c.bf16 %v250_v46, %v248_v45  ;;  %v555_v16 = vpack.c.bf16 %v275_v14, %v273_v13  ;;  %v279_v20 = vld [vmem:[%s1101_s5 + $0x118] sm:$0xff]  ;;  %v281_v47 = vld [vmem:[%s1101_s5 + $0x128] sm:$0xff] }
  0x20   :  { %v559_v22 = vpack.c.bf16 %v279_v20, %v277_v19  ;;  %v283_v48 = vld [vmem:[%s1101_s5 + $0x138] sm:$0xff]  ;;  %v285_v53 = vld [vmem:[%s1101_s5 + $0x148] sm:$0xff] }
  0x21   :  { %494 = vmatpush1.bf16.msra.mxu0 %v493_v51  ;;  %v252_v51 = vld [vmem:[%s1101_s5 + $0x40] sm:$0xff]  ;;  %534 = vmatpush1.bf16.msra.mxu1 %v533_v49  ;;  %v563_v49 = vpack.c.bf16 %v283_v48, %v281_v47  ;;  %v287_v54 = vld [vmem:[%s1101_s5 + $0x158] sm:$0xff]  ;;  %v289_v59 = vld [vmem:[%s1101_s5 + $0x168] sm:$0xff] }
  0x22   :  { %496 = vmatprep.subr.bf16.mxu0 %v495_v52  ;;  %v254_v52 = vld [vmem:[%s1101_s5 + $0x50] sm:$0xff]  ;;  %536 = vmatprep.subr.bf16.mxu1 %v535_v50  ;;  %v280_v50 = vld [vmem:[%s1101_s5 + $0x120] sm:$0xff]  ;;  %v291_v60 = vld [vmem:[%s1101_s5 + $0x178] sm:$0xff] }
  0x23   :  { %v537_v55 = vpack.c.bf16 %v254_v52, %v252_v51  ;;  %v282_v51 = vld [vmem:[%s1101_s5 + $0x130] sm:$0xff]  ;;  %v293_v1 = vld [vmem:[%s1101_s5 + $0x188] sm:$0xff]  ;;  %v295_v2 = vld [vmem:[%s1101_s5 + $0x198] sm:$0xff] }
  0x24   :  { %v565_v52 = vpack.c.bf16 %v282_v51, %v280_v50  ;;  %v299_v7 = vld [vmem:[%s1101_s5 + $0x1b8] sm:$0xff] }
  0x25   :  { %498 = vmatpush1.bf16.msra.mxu0 %v497_v57  ;;  %v256_v57 = vld [vmem:[%s1101_s5 + $0x60] sm:$0xff]  ;;  %538 = vmatpush1.bf16.msra.mxu1 %v537_v55  ;;  %v567_v55 = vpack.c.bf16 %v287_v54, %v285_v53  ;;  %v303_v13 = vld [vmem:[%s1101_s5 + $0x1d8] sm:$0xff] }
  0x26   :  { %500 = vmatprep.subr.bf16.mxu0 %v499_v58  ;;  %v258_v58 = vld [vmem:[%s1101_s5 + $0x70] sm:$0xff]  ;;  %540 = vmatprep.subr.bf16.mxu1 %v539_v56  ;;  %v284_v56 = vld [vmem:[%s1101_s5 + $0x140] sm:$0xff]  ;;  %v307_v19 = vld [vmem:[%s1101_s5 + $0x1f8] sm:$0xff] }
  0x27   :  { %v541_v61 = vpack.c.bf16 %v258_v58, %v256_v57  ;;  %v286_v57 = vld [vmem:[%s1101_s5 + $0x150] sm:$0xff] }
  0x28   :  { %v569_v58 = vpack.c.bf16 %v286_v57, %v284_v56 }
  0x29   :  { %502 = vmatpush1.bf16.msra.mxu0 %v501_v63  ;;  %v260_v63 = vld [vmem:[%s1101_s5 + $0x80] sm:$0xff]  ;;  %542 = vmatpush1.bf16.msra.mxu1 %v541_v61  ;;  %v571_v61 = vpack.c.bf16 %v291_v60, %v289_v59 }
  0x2a   :  { %504 = vmatprep.subr.bf16.mxu0 %v503_v0  ;;  %v262_v0 = vld [vmem:[%s1101_s5 + $0x90] sm:$0xff]  ;;  %544 = vmatprep.subr.bf16.mxu1 %v543_v62  ;;  %v288_v62 = vld [vmem:[%s1101_s5 + $0x160] sm:$0xff] }
  0x2b   :  { %v545_v3 = vpack.c.bf16 %v262_v0, %v260_v63  ;;  %v290_v63 = vld [vmem:[%s1101_s5 + $0x170] sm:$0xff] }
  0x2c   :  { %v573_v0 = vpack.c.bf16 %v290_v63, %v288_v62 }
  0x2d   :  { %506 = vmatpush1.bf16.msra.mxu0 %v505_v5  ;;  %v264_v5 = vld [vmem:[%s1101_s5 + $0xa0] sm:$0xff]  ;;  %546 = vmatpush1.bf16.msra.mxu1 %v545_v3 }
  0x2e   :  { %508 = vmatprep.subr.bf16.mxu0 %v507_v6  ;;  %v266_v6 = vld [vmem:[%s1101_s5 + $0xb0] sm:$0xff]  ;;  %548 = vmatprep.subr.bf16.mxu1 %v547_v4  ;;  %v292_v3 = vld [vmem:[%s1101_s5 + $0x180] sm:$0xff]  ;;  %v575_v4 = vpack.c.bf16 %v295_v2, %v293_v1 }
  0x2f   :  { %v549_v9 = vpack.c.bf16 %v266_v6, %v264_v5  ;;  %v294_v5 = vld [vmem:[%s1101_s5 + $0x190] sm:$0xff]  ;;  %v297_v6 = vld [vmem:[%s1101_s5 + $0x1a8] sm:$0xff] }
  0x30   :  { %v577_v8 = vpack.c.bf16 %v294_v5, %v292_v3 }
  0x31   :  { %510 = vmatpush1.bf16.msra.mxu0 %v509_v11  ;;  %v268_v11 = vld [vmem:[%s1101_s5 + $0xc0] sm:$0xff]  ;;  %550 = vmatpush1.bf16.msra.mxu1 %v549_v9  ;;  %v579_v9 = vpack.c.bf16 %v299_v7, %v297_v6 }
  0x32   :  { %512 = vmatprep.subr.bf16.mxu0 %v511_v12  ;;  %v270_v12 = vld [vmem:[%s1101_s5 + $0xd0] sm:$0xff]  ;;  %552 = vmatprep.subr.bf16.mxu1 %v551_v10  ;;  %v296_v10 = vld [vmem:[%s1101_s5 + $0x1a0] sm:$0xff] }
  0x33   :  { %v553_v15 = vpack.c.bf16 %v270_v12, %v268_v11  ;;  %v298_v11 = vld [vmem:[%s1101_s5 + $0x1b0] sm:$0xff]  ;;  %v301_v12 = vld [vmem:[%s1101_s5 + $0x1c8] sm:$0xff] }
  0x34   :  { %v581_v14 = vpack.c.bf16 %v298_v11, %v296_v10  ;;  %v391_v11 = vld [vmem:[%s1106_s7] sm:$0x3] }
  0x35   :  { %514 = vmatpush1.bf16.msra.mxu0 %v513_v17  ;;  %v272_v17 = vld [vmem:[%s1101_s5 + $0xe0] sm:$0xff]  ;;  %554 = vmatpush1.bf16.msra.mxu1 %v553_v15  ;;  %v583_v15 = vpack.c.bf16 %v303_v13, %v301_v12 }
  0x36   :  { %516 = vmatprep.subr.bf16.mxu0 %v515_v18  ;;  %v274_v18 = vld [vmem:[%s1101_s5 + $0xf0] sm:$0xff]  ;;  %556 = vmatprep.subr.bf16.mxu1 %v555_v16  ;;  %v300_v16 = vld [vmem:[%s1101_s5 + $0x1c0] sm:$0xff] }
  0x37   :  { %v557_v21 = vpack.c.bf16 %v274_v18, %v272_v17  ;;  %v302_v17 = vld [vmem:[%s1101_s5 + $0x1d0] sm:$0xff]  ;;  %v305_v18 = vld [vmem:[%s1101_s5 + $0x1e8] sm:$0xff]  ;;  %v392_v12 = vld [vmem:[%s1107_s8] sm:$0x3] }
  0x38   :  { %v585_v20 = vpack.c.bf16 %v302_v17, %v300_v16 }
  0x39   :  { %518 = vmatpush1.bf16.msra.mxu0 %v517_v23  ;;  %v276_v23 = vld [vmem:[%s1101_s5 + $0x100] sm:$0xff]  ;;  %558 = vmatpush1.bf16.msra.mxu1 %v557_v21  ;;  %v587_v21 = vpack.c.bf16 %v307_v19, %v305_v18  ;;  %v432_v18 = vrot.slane %v392_v12, %v956_v28 }
  0x3a   :  { %520 = vmatprep.subr.bf16.mxu0 %v519_v24  ;;  %v278_v24 = vld [vmem:[%s1101_s5 + $0x110] sm:$0xff]  ;;  %560 = vmatprep.subr.bf16.mxu1 %v559_v22  ;;  %v304_v22 = vld [vmem:[%s1101_s5 + $0x1e0] sm:$0xff] }
  0x3b   :  { %v561_v25 = vpack.c.bf16 %v278_v24, %v276_v23  ;;  %v306_v23 = vld [vmem:[%s1101_s5 + $0x1f0] sm:$0xff] }
  0x3c   :  { %v589_v24 = vpack.c.bf16 %v306_v23, %v304_v22 }
  0x3d   :  { %522 = vmatpush1.bf16.msra.mxu0 %v521_v29  ;;  %562 = vmatpush1.bf16.msra.mxu1 %v561_v25  ;;  %v97_v29 = vld [vmem:[%s1102_s2] sm:$0x3] }
  0x3e   :  { %524 = vmatprep.subr.bf16.mxu0 %v523_v30  ;;  %v961_v30 = vsub.s32 1, %v100_v27  ;;  %v102_v31 = vrot.slane %v97_v29, %v956_v28  ;;  %564 = vmatprep.subr.bf16.mxu1 %v563_v49 }
  0x40   :  { %v106_v32 = vrot.slane %v97_v29, %v961_v30  ;;  %v423_v16 = vrot.slane %v391_v11, %v961_v30  ;;  %v436_v19 = vrot.slane %v392_v12, %v961_v30 }
  0x41   :  { %526 = vmatpush1.bf16.msra.mxu0 %v525_v33  ;;  %566 = vmatpush1.bf16.msra.mxu1 %v565_v52 }
  0x42   :  { %568 = vmatprep.subr.bf16.mxu1 %v567_v55 }
  0x44   :  { %185 = vmatmul.mubr.f32.vlgmr.msra.gmra.mrb[0].mxu0 %v732_v41 }
  0x45   :  { %570 = vmatpush1.bf16.msra.mxu1 %v569_v58 }
  0x46   :  { %572 = vmatprep.subr.bf16.mxu1 %v571_v61 }
  0x49   :  { %574 = vmatpush1.bf16.msra.mxu1 %v573_v0 }
  0x4a   :  { %576 = vmatprep.subr.bf16.mxu1 %v575_v4 }
  0x4d   :  { %578 = vmatpush1.bf16.msra.mxu1 %v577_v8 }
  0x4e   :  { %580 = vmatprep.subr.bf16.mxu1 %v579_v9 }
  0x51   :  { %582 = vmatpush1.bf16.msra.mxu1 %v581_v14 }
  0x52   :  { %584 = vmatprep.subr.bf16.mxu1 %v583_v15  ;;  %v419_v15 = vrot.slane %v391_v11, %v956_v28 }
  0x55   :  { %586 = vmatpush1.bf16.msra.mxu1 %v585_v20 }
  0x56   :  { %588 = vmatprep.subr.bf16.mxu1 %v587_v21 }
  0x59   :  { %590 = vmatpush1.bf16.msra.mxu1 %v589_v24 }
 0x117   :  { %v186_v33 = vpop.f32.mrb[0].mxu0 }
 0x118   :  { %v965_v34 = vadd.f32 %v186_v33, %v102_v31  ;;  %v188_v35 = vpop.f32.mrb[1].mxu0 }
 0x119   :  { %v967_v36 = vadd.f32 %v188_v35, %v106_v32  ;;  %v191_v35 = vld [vmem:[%s1103_s3] sm:$0x3] }
 0x11a   :  { %v194_v37 = vsel %vm193_vm0, %v965_v34, 0.0  ;;  %v199_v38 = vmul.f32 %v965_v34, %v965_v34 }
 0x11b   :  { %v195_v39 = vsel %vm193_vm0, %v967_v36, 0.0  ;;  %v200_v40 = vmul.f32 %v967_v36, %v967_v36 }
 0x11c   :  { %v196_v42 = vadd.f32 %v195_v39, %v194_v37  ;;  %v201_v43 = vsel %vm193_vm0, %v199_v38, 0.0  ;;  %v192_v37 = vld [vmem:[%s1104_s4] sm:$0x3] }
 0x11d   :  { %v202_v45 = vsel %vm193_vm0, %v200_v40, 0.0  ;;  %v220_v40 = vrot.slane %v191_v35, %v956_v28  ;;  %v237_v47 = vrot.slane %v192_v37, %v961_v30 }
 0x11e   :  { %197 = vadd.xlane.f32.xlu0 %v196_v42  ;;  %v203_v46 = vadd.f32 %v202_v45, %v201_v43  ;;  %v224_v42 = vrot.slane %v191_v35, %v961_v30 }
 0x122   :  { %204 = vadd.xlane.f32.xlu0 %v203_v46  ;;  %v233_v46 = vrot.slane %v192_v37, %v956_v28 }
 0x1ab   :  { %v198_v25 = vpop.xlane.xlu0 %197 }
 0x1ac   :  { %v206_v26 = vmul.f32 0.005952381, %v198_v25 }
 0x1ae   :  { %v208_v29 = vmul.f32 %v206_v26, %v206_v26  ;;  %v210_v38 = vsub.f32 %v965_v34, %v206_v26  ;;  %v211_v39 = vsub.f32 %v967_v36, %v206_v26  ;;  %v308_v34 = vld [vmem:[%s1105_s6] sm:$0x3] }
 0x1af   :  { %v205_v27 = vpop.xlane.xlu0 %204  ;;  %v313_v36 = vrot.slane %v308_v34, %v956_v28  ;;  %v317_v55 = vrot.slane %v308_v34, %v961_v30 }
 0x1b0   :  { %v207_v31 = vmul.f32 0.005952381, %v205_v27 }
 0x1b2   :  { %v209_v32 = vsub.f32 %v207_v31, %v208_v29 }
 0x1b4   :  { %v212_v33 = vadd.f32 1e-05, %v209_v32 }
 0x1b6   :  { %591 = vrsqrt.f32 %v212_v33 }
 0x1c0   :  { %v592_v43 = vpop.eup %591 }
 0x1c1   :  { %v215_v45 = vmul.f32 %v592_v43, %v211_v39  ;;  %v214_v48 = vmul.f32 %v592_v43, %v210_v38 }
 0x1c3   :  { %v228_v49 = vmul.f32 %v224_v42, %v215_v45  ;;  %v227_v50 = vmul.f32 %v220_v40, %v214_v48 }
 0x1c5   :  { %v241_v51 = vadd.f32 %v237_v47, %v228_v49  ;;  %v240_v52 = vadd.f32 %v233_v46, %v227_v50 }
 0x1c7   :  { %v243_v53 = vmax.f32 %v241_v51, 0.0  ;;  %v242_v54 = vmax.f32 %v240_v52, 0.0 }
 0x1c9   :  { %384 = vmatprep.mubr.f32.mxu1 %v243_v53 }
 0x1ca   :  { %385 = vmatmul.mubr.f32.vlgmr.msra.gmra.mrb[0].mxu1 %v242_v54 }
 0x29d   :  { %v386_v56 = vpop.f32.mrb[0].mxu1 }
 0x29e   :  { %v387_v57 = vadd.f32 %v386_v56, %v313_v36  ;;  %v388_v58 = vpop.f32.mrb[1].mxu1 }
 0x29f   :  { %v389_v59 = vadd.f32 %v388_v58, %v317_v55 }
 0x2a0   :  { %v393_v60 = vsel %vm193_vm0, %v387_v57, 0.0  ;;  %v398_v61 = vmul.f32 %v387_v57, %v387_v57 }
 0x2a1   :  { %v394_v62 = vsel %vm193_vm0, %v389_v59, 0.0  ;;  %v399_v63 = vmul.f32 %v389_v59, %v389_v59 }
 0x2a2   :  { %v395_v0 = vadd.f32 %v394_v62, %v393_v60  ;;  %v400_v1 = vsel %vm193_vm0, %v398_v61, 0.0 }
 0x2a3   :  { %v401_v2 = vsel %vm193_vm0, %v399_v63, 0.0 }
 0x2a4   :  { %396 = vadd.xlane.f32.xlu1 %v395_v0  ;;  %v402_v3 = vadd.f32 %v401_v2, %v400_v1 }
 0x2a8   :  { %403 = vadd.xlane.f32.xlu1 %v402_v3 }
 0x331   :  { %v397_v4 = vpop.xlane.xlu1 %396 }
 0x332   :  { %v405_v5 = vmul.f32 0.005952381, %v397_v4 }
 0x334   :  { %v407_v7 = vmul.f32 %v405_v5, %v405_v5  ;;  %v409_v13 = vsub.f32 %v387_v57, %v405_v5  ;;  %v410_v14 = vsub.f32 %v389_v59, %v405_v5 }
 0x335   :  { %v404_v6 = vpop.xlane.xlu1 %403 }
 0x336   :  { %v406_v8 = vmul.f32 0.005952381, %v404_v6 }
 0x338   :  { %v408_v9 = vsub.f32 %v406_v8, %v407_v7 }
 0x33a   :  { %v411_v10 = vadd.f32 1e-05, %v408_v9 }
 0x33c   :  { %593 = vrsqrt.f32 %v411_v10 }
 0x346   :  { %v594_v17 = vpop.eup %593 }
 0x347   :  { %v413_v20 = vmul.f32 %v594_v17, %v409_v13  ;;  %v414_v21 = vmul.f32 %v594_v17, %v410_v14 }
 0x349   :  { %v426_v22 = vmul.f32 %v419_v15, %v413_v20  ;;  %v427_v23 = vmul.f32 %v423_v16, %v414_v21 }
 0x34b   :  { %v439_v24 = vadd.f32 %v432_v18, %v426_v22  ;;  %v440_v25 = vadd.f32 %v436_v19, %v427_v23 }
 0x34d   :  { %v441_v26 = vadd.f32 %v732_v41, %v439_v24  ;;  %v442_v27 = vadd.f32 %v440_v25, %v742_v44 }
 0x34f   :  { %v443_v29 = vmax.f32 %v441_v26, 0.0  ;;  %v444_v31 = vmax.f32 %v442_v27, 0.0 }
 0x351   :  { %v447_v32 = vcombine.low %v443_v29, %v444_v31 }
 0x353   :  { %462 = vst.sshfl [vmem:[%s1108_s9] sm:$0x33 pattern:$0x76325410] %v447_v32 }

</bundles_post_ra>
